<compile_context>
chip_gen: v7x
topology: tpu7x:2x2x1
jax: 0.10.0
libtpu: 0.0.40
codegen_flags: <defaults>
</compile_context>

<pallas_src>
import jax
import jax.numpy as jnp
from jax.experimental import pallas as pl
from jax.experimental.pallas import tpu as pltpu


def _pop_mean_kernel(x_ref, w_ref, o_ref):
    # x_ref: (block_b, N*T)   spike tile in its HBM dtype (cast here, on VPU)
    # w_ref: (N*T, N_pad)     grid-invariant averaging matrix (resident in VMEM)
    # o_ref: (block_b, N_pad) per-group mean, lane-dense (N_pad % 128 == 0)
    x = x_ref[...].astype(w_ref.dtype)
    o_ref[...] = jnp.dot(
        x, w_ref[...], preferred_element_type=jnp.float32
    ).astype(o_ref.dtype)


def _round_up(x, m):
    return ((x + m - 1) // m) * m


def _build_avg_matrix(n, t, n_pad, dtype):
    """W[k, j] = 1/T iff j < n and k in [j*T, (j+1)*T), else 0.  Shape (n*t, n_pad)."""
    row = jax.lax.broadcasted_iota(jnp.int32, (n * t, n_pad), 0)
    col = jax.lax.broadcasted_iota(jnp.int32, (n * t, n_pad), 1)
    start = col * t
    hit = (col < n) & (row >= start) & (row < start + t)
    return jnp.where(hit, jnp.asarray(1.0 / t, dtype), jnp.asarray(0.0, dtype))


def _choose_block_b(batch, row_bytes, w_bytes):
    """Largest batch tile that fits a ~24 MiB VMEM working set, with >=2 grid
    steps for large batches so both v7x TensorCores get work."""
    budget = 24 * 1024 * 1024
    avail = max(budget - w_bytes, 8 * row_bytes)
    vmem_rows = max(8, avail // row_bytes)
    hard_cap = 2048  # amortizes the ~0.35us per-step overhead on v5e/v6e

    if batch <= vmem_rows and batch <= hard_cap:
        if batch >= 512:
            # split roughly in half (multiple of 8) -> >= 2 parallel grid steps
            return min(_round_up(-(-batch // 2), 8), batch)
        return batch  # single block (block_b == full dim is always legal)
    return max(8, (min(hard_cap, vmem_rows) // 8) * 8)


def pop_spike_decode(spikes: jax.Array, *, assume_binary_spikes: bool = True) -> jax.Array:
    """spikes: (B, act_dim, pop_dim, T) -> (B, act_dim, pop_dim) = mean over T."""
    B, A, P, T = spikes.shape
    N = A * P
    N_pad = _round_up(N, 128)  # lane-dense output stores (unmasked vst)

    in_dtype = spikes.dtype
    in_bytes = jnp.dtype(in_dtype).itemsize
    is_float_in = jnp.issubdtype(in_dtype, jnp.floating)
    out_dtype = in_dtype if is_float_in else jnp.float32
    out_bytes = jnp.dtype(out_dtype).itemsize

    # bf16 x bf16 -> f32-accumulate is exact when spikes are {0,1} (or small
    # ints / already-bf16 data) and 1/T is a power of two; it is the native
    # MXU mode on all chips.  Otherwise keep f32 compute to match torch mean.
    t_pow2 = (T & (T - 1)) == 0
    use_bf16 = t_pow2 and (assume_binary_spikes or not is_float_in or in_dtype == jnp.bfloat16)
    compute_dtype = jnp.bfloat16 if use_bf16 else jnp.float32
    cd_bytes = jnp.dtype(compute_dtype).itemsize

    # Free, no-copy view: (B, A, P, T) -> (B, A*P*T).  No extra HBM pass.
    x = spikes.reshape(B, N * T)
    w = _build_avg_matrix(N, T, N_pad, compute_dtype)

    # VMEM working set per batch row (double-buffered in + out) and resident W.
    row_bytes = 2 * (N * T) * in_bytes + 2 * N_pad * out_bytes
    w_bytes = 2 * (N * T) * N_pad * cd_bytes
    block_b = _choose_block_b(B, row_bytes, w_bytes)
    grid = (pl.cdiv(B, block_b),)

    cost = pl.CostEstimate(
        flops=2 * B * (N * T) * N_pad,
        transcendentals=0,
        bytes_accessed=B * N * T * in_bytes + B * N_pad * out_bytes + (N * T) * N_pad * cd_bytes,
    )

    out = pl.pallas_call(
        _pop_mean_kernel,
        out_shape=jax.ShapeDtypeStruct((B, N_pad), out_dtype),
        grid=grid,
        in_specs=[
            pl.BlockSpec((block_b, N * T), lambda i: (i, 0)),
            # Grid-invariant block index -> DMA'd once, stays resident in VMEM.
            pl.BlockSpec((N * T, N_pad), lambda i: (0, 0)),
        ],
        out_specs=pl.BlockSpec((block_b, N_pad), lambda i: (i, 0)),
        compiler_params=pltpu.CompilerParams(
            dimension_semantics=("parallel",),
            vmem_limit_bytes=32 * 1024 * 1024,
        ),
        cost_estimate=cost,
    )(x, w)

    if N_pad != N:
        out = out[:, :N]
    return out.reshape(B, A, P)


if __name__ == "__main__":
    # PopSpikeDecoder(act_dim=4, pop_dim=32); module has no learnable params.
    act_dim, pop_dim = 4, 32
    batch, T = 2, 8

    key = jax.random.PRNGKey(0)
    # Spike trains are {0,1}; generate as bernoulli-like values cast to f32.
    spikes = (jax.random.uniform(key, (batch, act_dim, pop_dim, T)) > 0.5).astype(
        jnp.float32
    )

    out = pop_spike_decode(spikes)
    out = jax.block_until_ready(out)

    # Correctness check against plain-JAX reference of torch's spikes.mean(dim=-1).
    ref = jnp.mean(spikes, axis=-1)
    assert out.shape == (batch, act_dim, pop_dim), out.shape
    assert out.dtype == ref.dtype, (out.dtype, ref.dtype)
    assert jnp.allclose(out, ref, atol=1e-6), "mismatch vs reference"

    print("KERNEL_OK")
</pallas_src>

<mosaic_0001>
module attributes {stable_mosaic.version = 11 : i64} {
  func.func @_pop_mean_kernel(%arg0: i32, %arg1: memref<2x1024xf32, #tpu.memory_space<vmem>>, %arg2: memref<1024x128xbf16, #tpu.memory_space<vmem>>, %arg3: memref<2x128xf32, #tpu.memory_space<vmem>>) attributes {dimension_semantics = [#tpu.dimension_semantics<parallel>], iteration_bounds = array<i64: 1>, scalar_prefetch = 0 : i64, scratch_operands = 0 : i64, tpu.core_type = #tpu.core_type<tc>, window_params = [{transform_indices = @transform_0, window_bounds = array<i64: 2, 1024>}, {pipeline_mode = #tpu.pipeline_mode<synchronous>, transform_indices = @transform_1, window_bounds = array<i64: 1024, 128>}, {transform_indices = @transform_2, window_bounds = array<i64: 2, 128>}]} {
    %c0 = arith.constant 0 : index
    %c0_0 = arith.constant 0 : index
    %0 = vector.load %arg1[%c0, %c0_0] : memref<2x1024xf32, #tpu.memory_space<vmem>>, vector<2x1024xf32>
    %1 = arith.truncf %0 : vector<2x1024xf32> to vector<2x1024xbf16>
    %c0_1 = arith.constant 0 : index
    %c0_2 = arith.constant 0 : index
    %2 = vector.load %arg2[%c0_1, %c0_2] : memref<1024x128xbf16, #tpu.memory_space<vmem>>, vector<1024x128xbf16>
    %cst = arith.constant dense<0.000000e+00> : vector<2x128xf32>
    %3 = tpu.matmul %1, %2, %cst {dimension_numbers = #tpu.dot_dimension_numbers<[1], [0], [0], [1], [0, 0, 1, 1], [], []>} : vector<2x1024xbf16>, vector<1024x128xbf16>, vector<2x128xf32> -> vector<2x128xf32>
    %c0_3 = arith.constant 0 : index
    %c0_4 = arith.constant 0 : index
    %4 = vector.load %arg3[%c0_3, %c0_4] : memref<2x128xf32, #tpu.memory_space<vmem>>, vector<2x128xf32>
    tpu.vector_store %arg3[%c0_3, %c0_4], %3 {strides = array<i32>} : memref<2x128xf32, #tpu.memory_space<vmem>>, vector<2x128xf32>,
    return
  }
  func.func @transform_0(%arg0: i32) -> (i32, i32) {
    %c0_i32 = arith.constant 0 : i32
    %c0_i32_0 = arith.constant 0 : i32
    return %arg0, %c0_i32 : i32, i32
  }
  func.func @transform_1(%arg0: i32) -> (i32, i32) {
    %c0_i32 = arith.constant 0 : i32
    %c0_i32_0 = arith.constant 0 : i32
    %c0_i32_1 = arith.constant 0 : i32
    return %c0_i32, %c0_i32_0 : i32, i32
  }
  func.func @transform_2(%arg0: i32) -> (i32, i32) {
    %c0_i32 = arith.constant 0 : i32
    %c0_i32_0 = arith.constant 0 : i32
    return %arg0, %c0_i32 : i32, i32
  }
}

</mosaic_0001>

<bundles_post_ra>
// kernel: tpu_custom_call.1
= control target key start
LH: loop header
LB: loop body
LE: loop exit
PB: predicated region body
PF: predicated region fallthrough
CT: control target
= control target key end

     0   :  { %7 = vsyncpa [#allocation3], 0  ;;  %s1148_s0 = inlined_call_operand.hbm [shape: f32[2,1024], index: 0, kind: input, shape index: {}]   ;;  %s1149_s1 = inlined_call_operand.hbm [shape: bf16[1024,128], index: 1, kind: input, shape index: {}]   ;;  %s1150_s2 = inlined_call_operand.hbm [shape: f32[2,128], index: 2, kind: output, shape index: {}]  }
   0x1   :  { %8 = vsyncpa [#allocation6], 0 }
   0x2   :  { %9 = vsyncpa [#allocation4], 0  ;;  %s1078_s9 = smov [#allocation2]   ;;  %s1079_s11 = smov [#allocation5]  }
   0x3   :  { %s16_s10 = sshll.u32 %s1078_s9, 4  ;;  %s25_s12 = sshll.u32 %s1079_s11, 4  ;;  %s17_s10 = int_to_ptr.vmem [resolvable:$true] %s16_s10  ;;  %s1099_s12 = int_to_ptr.vmem [resolvable:$true] %s25_s12 }
   0x4   :  { %s1006_s15 = scalar_lea.hbm %s1148_s0, 256 }
   0x5   :  { %p1007_p0 = scmp.ne.s32.totalorder %s1148_s0, %s1006_s15  ;;  %p1010_p1 = scmp.lt.u32.totalorder %s1006_s15, %s1148_s0 }
   0x7   :  { %p1012_p2 = pnand %p1010_p1, %p1007_p0 }
   0x9   :  { %1015 = shalt.err (!%p1012_p2)
}
   0xa   :  { %s1016_s20 = scalar_lea.vmem %s17_s10, 256  ;;  %p1021_p4 = scmp.lt.s32.totalorder %s17_s10, %s17_s10 }
   0xb   :  { %p1017_p3 = scmp.ne.s32.totalorder %s17_s10, %s1016_s20  ;;  %p1022_p5 = scmp.lt.s32.totalorder %s1016_s20, %s1016_s20 }
   0xd   :  { %p1023_p6 = por %p1022_p5, %p1021_p4 }
   0xf   :  { %p1024_p7 = pnand %p1023_p6, %p1017_p3 }
  0x11   :  { %1027 = shalt.err (!%p1024_p7)
}
  0x12   :  { %19 = dma.hbm_to_vmem [thread:$0]  %s1148_s0, 256, %s17_s10, [#allocation3]  }
  0x13   :  { %s1028_s25 = scalar_lea.hbm %s1149_s1, 8192 }
  0x14   :  { %p1029_p8 = scmp.ne.s32.totalorder %s1149_s1, %s1028_s25  ;;  %p1032_p9 = scmp.lt.u32.totalorder %s1028_s25, %s1149_s1 }
  0x16   :  { %p1034_p10 = pnand %p1032_p9, %p1029_p8 }
  0x18   :  { %1037 = shalt.err (!%p1034_p10)
}
  0x19   :  { %s1038_s30 = scalar_lea.vmem %s1099_s12, 8192  ;;  %p1043_p12 = scmp.lt.s32.totalorder %s1099_s12, %s1099_s12 }
  0x1a   :  { %p1039_p11 = scmp.ne.s32.totalorder %s1099_s12, %s1038_s30  ;;  %p1044_p13 = scmp.lt.s32.totalorder %s1038_s30, %s1038_s30 }
  0x1c   :  { %p1045_p0 = por %p1044_p13, %p1043_p12 }
  0x1e   :  { %p1046_p1 = pnand %p1045_p0, %p1039_p11 }
  0x20   :  { %1049 = shalt.err (!%p1046_p1)
}
  0x21   :  { %s1080_s0 = smov 64   ;;  %s1081_s3 = smov 4  }
  0x22   :  { %31 = dma.hbm_to_vmem [thread:$0]  %s1149_s1, 8192, %s1099_s12, [#allocation6], %s1080_s0, %s1080_s0, %s1081_s3  }
  0x23   :  { %1072 = dma.done.wait [#allocation3], 256  }
  0x24   :  { %1073 = vsyncadd [#allocation3], 4294967040 }
  0x25   :  { %1074 = dma.done.wait [#allocation6], 8192  }
  0x26   :  { %1075 = vsyncadd [#allocation6], 4294959104  ;;  %v940_v0 = vld [vmem:[#allocation5 + $0x40] sm:$0xff]   ;;  %v944_v4 = vld [vmem:[#allocation5 + $0x48] sm:$0xff]   ;;  %v1082_v22 = vmov 1983009808   ;;  %v47_v24 = vlaneseq }
  0x27   :  { %v941_v1 = vld [vmem:[#allocation5 + $0xc0] sm:$0xff]   ;;  %846 = vmatprep.subr.bf16.mxu0 %v940_v0  ;;  %v945_v5 = vld [vmem:[#allocation5 + $0xc8] sm:$0xff]   ;;  %v948_v8 = vld [vmem:[#allocation5 + $0x50] sm:$0xff]   ;;  %v45_v23 = vunpack.c.l.s4 %v1082_v22  ;;  %s1083_s1 = smov [#allocation7]  }
  0x28   :  { %v942_v2 = vld [vmem:[#allocation5] sm:$0xff]   ;;  %868 = vmatprep.subr.bf16.mxu1 %v941_v1  ;;  %v946_v6 = vld [vmem:[#allocation5 + $0x8] sm:$0xff]   ;;  %v949_v9 = vld [vmem:[#allocation5 + $0xd0] sm:$0xff]   ;;  %v48_v30 = vshrl.u32 %v47_v24, 7  ;;  %s772_s6 = sshll.u32 %s1083_s1, 4  ;;  %s773_s6 = int_to_ptr.vmem [resolvable:$true] %s772_s6 }
  0x29   :  { %v943_v3 = vld [vmem:[#allocation5 + $0x80] sm:$0xff]   ;;  %847 = vmatpush3.bf16.msra.mxu0 %v942_v2  ;;  %v947_v7 = vld [vmem:[#allocation5 + $0x88] sm:$0xff]   ;;  %v950_v10 = vld [vmem:[#allocation5 + $0x10] sm:$0xff]   ;;  %v46_v29 = vunpack.c.0.s8 %v45_v23  ;;  %s1050_s7 = scalar_lea.vmem %s773_s6, 32  ;;  %p1055_p3 = scmp.lt.s32.totalorder %s773_s6, %s773_s6 }
  0x2a   :  { %869 = vmatpush3.bf16.msra.mxu1 %v943_v3  ;;  %848 = vmatprep.subr.bf16.mxu0 %v944_v4  ;;  %v951_v11 = vld [vmem:[#allocation5 + $0x90] sm:$0xff]   ;;  %v952_v12 = vld [vmem:[#allocation5 + $0x58] sm:$0xff]   ;;  %v956_v16 = vld [vmem:[#allocation5 + $0x60] sm:$0xff]   ;;  %p1051_p2 = scmp.ne.s32.totalorder %s773_s6, %s1050_s7  ;;  %p1056_p4 = scmp.lt.s32.totalorder %s1050_s7, %s1050_s7 }
  0x2b   :  { %870 = vmatprep.subr.bf16.mxu1 %v945_v5  ;;  %v953_v13 = vld [vmem:[#allocation5 + $0xd8] sm:$0xff]   ;;  %v957_v17 = vld [vmem:[#allocation5 + $0xe0] sm:$0xff]   ;;  %v960_v20 = vld [vmem:[#allocation5 + $0x68] sm:$0xff]   ;;  %v1130_v35 = vsub.s32 %v46_v29, %v48_v30 }
  0x2c   :  { %v954_v14 = vld [vmem:[#allocation5 + $0x18] sm:$0xff]   ;;  %v958_v18 = vld [vmem:[#allocation5 + $0x20] sm:$0xff]   ;;  %v961_v21 = vld [vmem:[#allocation5 + $0xe8] sm:$0xff]   ;;  %p1057_p5 = por %p1056_p4, %p1055_p3 }
  0x2d   :  { %849 = vmatpush3.bf16.msra.mxu0 %v946_v6  ;;  %v955_v15 = vld [vmem:[#allocation5 + $0x98] sm:$0xff]   ;;  %v959_v19 = vld [vmem:[#allocation5 + $0xa0] sm:$0xff]   ;;  %v962_v25 = vld [vmem:[#allocation5 + $0x28] sm:$0xff]  }
  0x2e   :  { %871 = vmatpush3.bf16.msra.mxu1 %v947_v7  ;;  %850 = vmatprep.subr.bf16.mxu0 %v948_v8  ;;  %v963_v26 = vld [vmem:[#allocation5 + $0xa8] sm:$0xff]   ;;  %v964_v27 = vld [vmem:[#allocation5 + $0x70] sm:$0xff]   ;;  %v968_v33 = vld [vmem:[#allocation5 + $0x78] sm:$0xff]   ;;  %p1058_p6 = pnand %p1057_p5, %p1051_p2 }
  0x2f   :  { %872 = vmatprep.subr.bf16.mxu1 %v949_v9  ;;  %v965_v28 = vld [vmem:[#allocation5 + $0xf0] sm:$0xff]   ;;  %v969_v34 = vld [vmem:[#allocation5 + $0xf8] sm:$0xff]   ;;  %v973_v41 = vld [vmem:[#allocation5 + $0x140] sm:$0xff]  }
  0x30   :  { %v966_v31 = vld [vmem:[#allocation5 + $0x30] sm:$0xff]   ;;  %v970_v36 = vld [vmem:[#allocation5 + $0x38] sm:$0xff]   ;;  %v974_v42 = vld [vmem:[#allocation5 + $0x1c0] sm:$0xff]  }
  0x31   :  { %851 = vmatpush3.bf16.msra.mxu0 %v950_v10  ;;  %v967_v32 = vld [vmem:[#allocation5 + $0xb0] sm:$0xff]   ;;  %v971_v37 = vld [vmem:[#allocation5 + $0xb8] sm:$0xff]   ;;  %v975_v48 = vld [vmem:[#allocation5 + $0x100] sm:$0xff]  }
  0x32   :  { %873 = vmatpush3.bf16.msra.mxu1 %v951_v11  ;;  %852 = vmatprep.subr.bf16.mxu0 %v952_v12  ;;  %v39_v38 = vld [vmem:[#allocation2] sm:$0xff]  ;;  %v977_v50 = vld [vmem:[#allocation5 + $0x148] sm:$0xff]   ;;  %v976_v52 = vld [vmem:[#allocation5 + $0x180] sm:$0xff]  }
  0x33   :  { %874 = vmatprep.subr.bf16.mxu1 %v953_v13  ;;  %v50_v39 = vrot.slane %v39_v38, %v1130_v35  ;;  %v43_v40 = vcombine.high %v39_v38, %v39_v38  ;;  %v978_v53 = vld [vmem:[#allocation5 + $0x1c8] sm:$0xff]   ;;  %v981_v55 = vld [vmem:[#allocation5 + $0x150] sm:$0xff]   ;;  %v985_v59 = vld [vmem:[#allocation5 + $0x158] sm:$0xff]  }
  0x34   :  { %v979_v54 = vld [vmem:[#allocation5 + $0x108] sm:$0xff]   ;;  %v982_v57 = vld [vmem:[#allocation5 + $0x1d0] sm:$0xff]   ;;  %v986_v61 = vld [vmem:[#allocation5 + $0x1d8] sm:$0xff]  }
  0x35   :  { %853 = vmatpush3.bf16.msra.mxu0 %v954_v14  ;;  %v58_v43 = vcombine.high %v50_v39, %v50_v39  ;;  %v57_v44 = vrot.slane %v43_v40, %v1130_v35  ;;  %v85_v45 = vpack.c.bf16 %v50_v39, %v50_v39  ;;  %v980_v56 = vld [vmem:[#allocation5 + $0x188] sm:$0xff]   ;;  %v983_v58 = vld [vmem:[#allocation5 + $0x110] sm:$0xff]   ;;  %v987_v62 = vld [vmem:[#allocation5 + $0x118] sm:$0xff]  }
  0x36   :  { %875 = vmatpush3.bf16.msra.mxu1 %v955_v15  ;;  %854 = vmatprep.subr.bf16.mxu0 %v956_v16  ;;  %v984_v60 = vld [vmem:[#allocation5 + $0x190] sm:$0xff]   ;;  %v989_v63 = vld [vmem:[#allocation5 + $0x160] sm:$0xff]   ;;  %v988_v0 = vld [vmem:[#allocation5 + $0x198] sm:$0xff]  }
  0x37   :  { %876 = vmatprep.subr.bf16.mxu1 %v957_v17  ;;  %v86_v46 = vpack.c.bf16 %v58_v43, %v58_v43  ;;  %v59_v47 = vcombine.high %v57_v44, %v57_v44  ;;  %v87_v49 = vpack.c.bf16 %v57_v44, %v57_v44  ;;  %v990_v1 = vld [vmem:[#allocation5 + $0x1e0] sm:$0xff]   ;;  %v993_v3 = vld [vmem:[#allocation5 + $0x168] sm:$0xff]   ;;  %v997_v7 = vld [vmem:[#allocation5 + $0x170] sm:$0xff]  }
  0x38   :  { %v991_v2 = vld [vmem:[#allocation5 + $0x120] sm:$0xff]   ;;  %v994_v5 = vld [vmem:[#allocation5 + $0x1e8] sm:$0xff]   ;;  %v998_v9 = vld [vmem:[#allocation5 + $0x1f0] sm:$0xff]  }
  0x39   :  { %855 = vmatpush3.bf16.msra.mxu0 %v958_v18  ;;  %637 = vmatprep.mubr.bf16.mxu0 %v86_v46  ;;  %v88_v51 = vpack.c.bf16 %v59_v47, %v59_v47  ;;  %v992_v4 = vld [vmem:[#allocation5 + $0x1a0] sm:$0xff]   ;;  %v995_v6 = vld [vmem:[#allocation5 + $0x128] sm:$0xff]   ;;  %v999_v10 = vld [vmem:[#allocation5 + $0x130] sm:$0xff]  }
  0x3a   :  { %877 = vmatpush3.bf16.msra.mxu1 %v959_v19  ;;  %856 = vmatprep.subr.bf16.mxu0 %v960_v20  ;;  %v996_v8 = vld [vmem:[#allocation5 + $0x1a8] sm:$0xff]   ;;  %v1001_v11 = vld [vmem:[#allocation5 + $0x178] sm:$0xff]   ;;  %v1000_v12 = vld [vmem:[#allocation5 + $0x1b0] sm:$0xff]  }
  0x3b   :  { %878 = vmatprep.subr.bf16.mxu1 %v961_v21  ;;  %677 = vmatprep.mubr.bf16.mxu1 %v88_v51  ;;  %v1002_v13 = vld [vmem:[#allocation5 + $0x1f8] sm:$0xff]  }
  0x3c   :  { %v40_v14 = vld [vmem:[#allocation2 + $0x8] sm:$0xff] }
  0x3d   :  { %857 = vmatpush3.bf16.msra.mxu0 %v962_v25  ;;  %v1003_v15 = vld [vmem:[#allocation5 + $0x138] sm:$0xff]   ;;  %v67_v16 = vrot.slane %v40_v14, %v1130_v35  ;;  %v60_v17 = vcombine.high %v40_v14, %v40_v14 }
  0x3e   :  { %879 = vmatpush3.bf16.msra.mxu1 %v963_v26  ;;  %858 = vmatprep.subr.bf16.mxu0 %v964_v27  ;;  %v1004_v18 = vld [vmem:[#allocation5 + $0x1b8] sm:$0xff]  }
  0x3f   :  { %880 = vmatprep.subr.bf16.mxu1 %v965_v28  ;;  %v75_v19 = vcombine.high %v67_v16, %v67_v16  ;;  %v74_v20 = vrot.slane %v60_v17, %v1130_v35  ;;  %v89_v21 = vpack.c.bf16 %v67_v16, %v67_v16 }
  0x41   :  { %859 = vmatpush3.bf16.msra.mxu0 %v966_v31  ;;  %v90_v22 = vpack.c.bf16 %v75_v19, %v75_v19  ;;  %v76_v23 = vcombine.high %v74_v20, %v74_v20  ;;  %v91_v24 = vpack.c.bf16 %v74_v20, %v74_v20 }
  0x42   :  { %881 = vmatpush3.bf16.msra.mxu1 %v967_v32  ;;  %860 = vmatprep.subr.bf16.mxu0 %v968_v33 }
  0x43   :  { %882 = vmatprep.subr.bf16.mxu1 %v969_v34  ;;  %v92_v25 = vpack.c.bf16 %v76_v23, %v76_v23 }
  0x45   :  { %861 = vmatpush3.bf16.msra.mxu0 %v970_v36 }
  0x46   :  { %883 = vmatpush3.bf16.msra.mxu1 %v971_v37  ;;  %890 = vmatprep.subr.bf16.mxu0 %v973_v41 }
  0x47   :  { %912 = vmatprep.subr.bf16.mxu1 %v974_v42 }
  0x48   :  { %638 = vmatmul.mubr.bf16.vlgmr.msra.gmra.mrb[0].mxu0 %v85_v45 }
  0x49   :  { %891 = vmatpush3.bf16.msra.mxu0 %v975_v48  ;;  %678 = vmatmul.mubr.bf16.vlgmr.msra.gmra.mrb[0].mxu1 %v87_v49 }
  0x4a   :  { %892 = vmatprep.subr.bf16.mxu0 %v977_v50  ;;  %913 = vmatpush3.bf16.msra.mxu1 %v976_v52 }
  0x4b   :  { %914 = vmatprep.subr.bf16.mxu1 %v978_v53  ;;  %717 = vmatprep.mubr.bf16.mxu0 %v90_v22 }
  0x4c   :  { %757 = vmatprep.mubr.bf16.mxu1 %v92_v25 }
  0x4d   :  { %893 = vmatpush3.bf16.msra.mxu0 %v979_v54 }
  0x4e   :  { %894 = vmatprep.subr.bf16.mxu0 %v981_v55  ;;  %915 = vmatpush3.bf16.msra.mxu1 %v980_v56 }
  0x4f   :  { %916 = vmatprep.subr.bf16.mxu1 %v982_v57 }
  0x51   :  { %895 = vmatpush3.bf16.msra.mxu0 %v983_v58 }
  0x52   :  { %896 = vmatprep.subr.bf16.mxu0 %v985_v59  ;;  %917 = vmatpush3.bf16.msra.mxu1 %v984_v60 }
  0x53   :  { %918 = vmatprep.subr.bf16.mxu1 %v986_v61 }
  0x55   :  { %897 = vmatpush3.bf16.msra.mxu0 %v987_v62 }
  0x56   :  { %898 = vmatprep.subr.bf16.mxu0 %v989_v63  ;;  %919 = vmatpush3.bf16.msra.mxu1 %v988_v0 }
  0x57   :  { %920 = vmatprep.subr.bf16.mxu1 %v990_v1 }
  0x59   :  { %899 = vmatpush3.bf16.msra.mxu0 %v991_v2 }
  0x5a   :  { %900 = vmatprep.subr.bf16.mxu0 %v993_v3  ;;  %921 = vmatpush3.bf16.msra.mxu1 %v992_v4 }
  0x5b   :  { %922 = vmatprep.subr.bf16.mxu1 %v994_v5 }
  0x5d   :  { %901 = vmatpush3.bf16.msra.mxu0 %v995_v6 }
  0x5e   :  { %902 = vmatprep.subr.bf16.mxu0 %v997_v7  ;;  %923 = vmatpush3.bf16.msra.mxu1 %v996_v8 }
  0x5f   :  { %924 = vmatprep.subr.bf16.mxu1 %v998_v9 }
  0x61   :  { %903 = vmatpush3.bf16.msra.mxu0 %v999_v10 }
  0x62   :  { %904 = vmatprep.subr.bf16.mxu0 %v1001_v11  ;;  %925 = vmatpush3.bf16.msra.mxu1 %v1000_v12 }
  0x63   :  { %926 = vmatprep.subr.bf16.mxu1 %v1002_v13 }
  0x65   :  { %905 = vmatpush3.bf16.msra.mxu0 %v1003_v15 }
  0x66   :  { %927 = vmatpush3.bf16.msra.mxu1 %v1004_v18 }
  0x68   :  { %718 = vmatmul.mubr.bf16.vlgmr.msra.gmra.mrb[4].mxu0 %v89_v21 }
  0x69   :  { %758 = vmatmul.mubr.bf16.vlgmr.msra.gmra.mrb[4].mxu1 %v91_v24 }
 0x11b   :  { %v862_v26 = vpop.f32.mrb[0].mxu0 }
 0x11c   :  { %v863_v27 = vpop.f32.mrb[1].mxu0  ;;  %v884_v28 = vpop.f32.mrb[0].mxu1 }
 0x11d   :  { %v864_v29 = vadd.f32 %v863_v27, %v862_v26  ;;  %v865_v30 = vpop.f32.mrb[2].mxu0  ;;  %v885_v31 = vpop.f32.mrb[1].mxu1 }
 0x11e   :  { %v866_v32 = vpop.f32.mrb[3].mxu0  ;;  %v886_v33 = vadd.f32 %v885_v31, %v884_v28  ;;  %v887_v34 = vpop.f32.mrb[2].mxu1 }
 0x11f   :  { %v888_v35 = vpop.f32.mrb[3].mxu1 }
 0x120   :  { %v680_v36 = vadd.f32 %v886_v33, %v864_v29 }
 0x13b   :  { %v906_v37 = vpop.f32.mrb[4].mxu0 }
 0x13c   :  { %v907_v38 = vpop.f32.mrb[5].mxu0  ;;  %v928_v39 = vpop.f32.mrb[4].mxu1 }
 0x13d   :  { %v908_v40 = vadd.f32 %v907_v38, %v906_v37  ;;  %v909_v41 = vpop.f32.mrb[6].mxu0  ;;  %v929_v42 = vpop.f32.mrb[5].mxu1 }
 0x13e   :  { %v910_v43 = vpop.f32.mrb[7].mxu0  ;;  %v930_v45 = vadd.f32 %v929_v42, %v928_v39  ;;  %v931_v46 = vpop.f32.mrb[6].mxu1 }
 0x13f   :  { %v720_v44 = vadd.f32 %v908_v40, %v680_v36  ;;  %v932_v47 = vpop.f32.mrb[7].mxu1 }
 0x141   :  { %v760_v48 = vadd.f32 %v930_v45, %v720_v44 }
 0x143   :  { %765 = vst [vmem:[#allocation7] sm:$0x3] %v760_v48 }
 0x144   :  { %1061 = shalt.err (!%p1058_p6)
}
 0x145   :  { %s1062_s10 = scalar_lea.hbm %s1150_s2, 32 }
 0x146   :  { %p1063_p7 = scmp.ne.s32.totalorder %s1150_s2, %s1062_s10  ;;  %p1066_p8 = scmp.lt.u32.totalorder %s1062_s10, %s1150_s2 }
 0x148   :  { %p1068_p9 = pnand %p1066_p8, %p1063_p7 }
 0x14a   :  { %1071 = shalt.err (!%p1068_p9)
}
 0x14b   :  { %775 = dma.vmem_to_hbm [thread:$0]  %s773_s6, 32, %s1150_s2, [#allocation4]  }
 0x14c   :  { %1076 = dma.done.wait [#allocation4], 32  }
 0x14d   :  { %1077 = vsyncadd [#allocation4], 4294967264 }
 0x14e   :  { %779 = vsyncpa [#allocation3], 1 }
 0x14f   :  { %780 = vsyncpa [#allocation6], 1 }
 0x150   :  { %781 = vsyncpa [#allocation4], 1 }

</bundles_post_ra>
